<compile_context>
chip_gen: v5e
topology: v5e:2x2
jax: 0.10.0
libtpu: 0.0.40
codegen_flags: <defaults>
</compile_context>

<pallas_src>
import functools

import jax
import jax.numpy as jnp
from jax.experimental import pallas as pl
from jax.experimental.pallas import tpu as pltpu

_LANES = 128
_BOXES_PER_ROW = _LANES // 4  # 32 boxes per 128-lane row


def _box_to_roi_kernel(x_ref, o_ref, *, inv_scale, half_scale, apply_scale):
    # x_ref / o_ref: (block_rows, 128) VMEM tiles.
    # Lane layout within each row: [cx, cy, w, h] x 32 boxes.
    x = x_ref[...]
    lane = jax.lax.broadcasted_iota(jnp.int32, x.shape, 1)
    is_min = (lane & 3) < 2  # center lanes -> min corner; size lanes -> max corner

    # fwd[p] = x[p + 2]  (size aligned onto the center lanes)
    # bwd[p] = x[p - 2]  (center aligned onto the size lanes)
    # Min lanes (p%4 in {0,1}) only read fwd, max lanes (p%4 in {2,3}) only
    # read bwd, so the wrap-around lanes never matter.
    fwd = jnp.roll(x, -2, axis=1)
    bwd = jnp.roll(x, 2, axis=1)

    center = jnp.where(is_min, x, bwd)
    size = jnp.where(is_min, fwd, x)
    signed_half = jnp.where(is_min, -half_scale, half_scale).astype(x.dtype)

    if apply_scale:
        out = center * jnp.asarray(inv_scale, x.dtype) + size * signed_half
    else:
        out = center + size * signed_half
    o_ref[...] = out.astype(o_ref.dtype)


def box_to_roi(boxes, feature_map_scale=1.0, *, max_block_rows=4096):
    """Pallas implementation of BoxToRoi.forward.

    boxes: (N, 4) array, last dim = [cx, cy, w, h].
    Returns (N, 4) = [x_min, y_min, x_max, y_max] / feature_map_scale.
    """
    n, c = boxes.shape
    if c != 4:
        raise ValueError("boxes must have 4 columns: [cx, cy, w, h]")

    scale = float(feature_map_scale)
    apply_scale = scale != 1.0
    inv_scale = 1.0 / scale
    half_scale = 0.5 * inv_scale

    # Lane-dense view: pad to a whole number of 128-lane rows (32 boxes per
    # row) and reinterpret the contiguous buffer.  When N is already a
    # multiple of 32 this is a pure reshape with zero data movement.
    pad_boxes = (-n) % _BOXES_PER_ROW
    flat = boxes.reshape(-1)
    if pad_boxes:
        flat = jnp.pad(flat, (0, pad_boxes * 4))
    rows = (n + pad_boxes) // _BOXES_PER_ROW
    x2d = flat.reshape(rows, _LANES)

    # Block sizing: full extent (single block, no (8,128) constraint) for
    # small inputs; otherwise a multiple of 8 rows capped at max_block_rows
    # (default 4096 rows * 128 lanes * 4 B = 2 MiB per operand per block).
    if rows <= max_block_rows:
        block_rows = rows
    else:
        block_rows = max(8, (max_block_rows // 8) * 8)
    grid = (pl.cdiv(rows, block_rows),)

    kernel = functools.partial(
        _box_to_roi_kernel,
        inv_scale=inv_scale,
        half_scale=half_scale,
        apply_scale=apply_scale,
    )

    out2d = pl.pallas_call(
        kernel,
        out_shape=jax.ShapeDtypeStruct((rows, _LANES), boxes.dtype),
        grid_spec=pltpu.PrefetchScalarGridSpec(
            num_scalar_prefetch=0,
            grid=grid,
            in_specs=[pl.BlockSpec((block_rows, _LANES), lambda i: (i, 0))],
            out_specs=pl.BlockSpec((block_rows, _LANES), lambda i: (i, 0)),
        ),
        compiler_params=pltpu.CompilerParams(
            dimension_semantics=("parallel",),
        ),
    )(x2d)

    out_flat = out2d.reshape(-1)
    if pad_boxes:
        out_flat = out_flat[: n * 4]
    return out_flat.reshape(n, 4)


def box_to_roi_ref(boxes, feature_map_scale=1.0):
    """Pure-JAX reference matching the PyTorch module."""
    min_corner = boxes[:, :2] - boxes[:, 2:] / 2
    max_corner = boxes[:, :2] + boxes[:, 2:] / 2
    corners = jnp.concatenate([min_corner, max_corner], axis=1)
    return corners / feature_map_scale


if __name__ == "__main__":
    key = jax.random.PRNGKey(0)
    k_c1, k_s1, k_c2, k_s2 = jax.random.split(key, 4)

    # Case 1: small N (single full-extent block; N < 32 exercises padding)
    # with a non-unit scale to exercise the divide.
    n1 = 16
    scale = 2.0
    centers = jax.random.uniform(k_c1, (n1, 2), jnp.float32, 0.0, 64.0)
    sizes = jax.random.uniform(k_s1, (n1, 2), jnp.float32, 1.0, 32.0)
    boxes1 = jnp.concatenate([centers, sizes], axis=1)  # (16, 4) [cx, cy, w, h]

    out1 = jax.block_until_ready(box_to_roi(boxes1, scale))
    ref1 = box_to_roi_ref(boxes1, scale)
    assert out1.shape == (n1, 4)
    assert out1.dtype == boxes1.dtype
    assert jnp.allclose(out1, ref1, atol=1e-6, rtol=1e-6)

    # Case 2: exercise the tiled path (multi-step grid + partial last block
    # + row padding) with a tiny max_block_rows so the test stays small.
    n2 = 1000
    centers2 = jax.random.uniform(k_c2, (n2, 2), jnp.float32, 0.0, 128.0)
    sizes2 = jax.random.uniform(k_s2, (n2, 2), jnp.float32, 1.0, 16.0)
    boxes2 = jnp.concatenate([centers2, sizes2], axis=1)

    out2 = jax.block_until_ready(box_to_roi(boxes2, 1.0, max_block_rows=24))
    ref2 = box_to_roi_ref(boxes2, 1.0)
    assert out2.shape == (n2, 4)
    assert jnp.allclose(out2, ref2, atol=1e-6, rtol=1e-6)

    print("KERNEL_OK")
</pallas_src>

<mosaic_0001>
module attributes {stable_mosaic.version = 11 : i64} {
  func.func @_box_to_roi_kernel(%arg0: i32, %arg1: memref<1x128xf32, #tpu.memory_space<vmem>>, %arg2: memref<1x128xf32, #tpu.memory_space<vmem>>) attributes {dimension_semantics = [#tpu.dimension_semantics<parallel>], iteration_bounds = array<i64: 1>, scalar_prefetch = 0 : i64, scratch_operands = 0 : i64, tpu.core_type = #tpu.core_type<tc>, window_params = [{transform_indices = @transform_0, window_bounds = array<i64: 1, 128>}, {transform_indices = @transform_1, window_bounds = array<i64: 1, 128>}]} {
    %c0 = arith.constant 0 : index
    %c0_0 = arith.constant 0 : index
    %0 = vector.load %arg1[%c0, %c0_0] : memref<1x128xf32, #tpu.memory_space<vmem>>, vector<1x128xf32>
    %1 = tpu.iota {dimensions = array<i32: 1>} : vector<1x128xi32>
    %c3_i32 = arith.constant 3 : i32
    %2 = vector.broadcast %c3_i32 : i32 to vector<1x128xi32>
    %3 = arith.andi %1, %2 : vector<1x128xi32>
    %c2_i32 = arith.constant 2 : i32
    %4 = vector.broadcast %c2_i32 : i32 to vector<1x128xi32>
    %5 = arith.cmpi slt, %3, %4 : vector<1x128xi32>
    %6 = vector.extract_strided_slice %0 {offsets = [0, 2], sizes = [1, 126], strides = [1, 1]} : vector<1x128xf32> to vector<1x126xf32>
    %7 = vector.extract_strided_slice %0 {offsets = [0, 0], sizes = [1, 2], strides = [1, 1]} : vector<1x128xf32> to vector<1x2xf32>
    %8 = tpu.concatenate %6, %7 in 1 : vector<1x126xf32>, vector<1x2xf32> -> vector<1x128xf32>
    %9 = vector.extract_strided_slice %0 {offsets = [0, 126], sizes = [1, 2], strides = [1, 1]} : vector<1x128xf32> to vector<1x2xf32>
    %10 = vector.extract_strided_slice %0 {offsets = [0, 0], sizes = [1, 126], strides = [1, 1]} : vector<1x128xf32> to vector<1x126xf32>
    %11 = tpu.concatenate %9, %10 in 1 : vector<1x2xf32>, vector<1x126xf32> -> vector<1x128xf32>
    %12 = arith.select %5, %0, %11 : vector<1x128xi1>, vector<1x128xf32>
    %13 = arith.select %5, %8, %0 : vector<1x128xi1>, vector<1x128xf32>
    %cst = arith.constant -2.500000e-01 : f32
    %cst_1 = arith.constant 2.500000e-01 : f32
    %14 = vector.broadcast %cst : f32 to vector<1x128xf32>
    %15 = vector.broadcast %cst_1 : f32 to vector<1x128xf32>
    %16 = arith.select %5, %14, %15 : vector<1x128xi1>, vector<1x128xf32>
    %cst_2 = arith.constant 5.000000e-01 : f32
    %17 = vector.broadcast %cst_2 : f32 to vector<1x128xf32>
    %18 = arith.mulf %12, %17 : vector<1x128xf32>
    %19 = arith.mulf %13, %16 : vector<1x128xf32>
    %20 = arith.addf %18, %19 : vector<1x128xf32>
    %c0_3 = arith.constant 0 : index
    %c0_4 = arith.constant 0 : index
    %21 = vector.load %arg2[%c0_3, %c0_4] : memref<1x128xf32, #tpu.memory_space<vmem>>, vector<1x128xf32>
    tpu.vector_store %arg2[%c0_3, %c0_4], %20 {strides = array<i32>} : memref<1x128xf32, #tpu.memory_space<vmem>>, vector<1x128xf32>,
    return
  }
  func.func @transform_0(%arg0: i32) -> (i32, i32) {
    %c0_i32 = arith.constant 0 : i32
    %c0_i32_0 = arith.constant 0 : i32
    return %arg0, %c0_i32 : i32, i32
  }
  func.func @transform_1(%arg0: i32) -> (i32, i32) {
    %c0_i32 = arith.constant 0 : i32
    %c0_i32_0 = arith.constant 0 : i32
    return %arg0, %c0_i32 : i32, i32
  }
}

</mosaic_0001>

<bundles_post_ra>
// kernel: tpu_custom_call.1
= control target key start
LH: loop header
LB: loop body
LE: loop exit
PB: predicated region body
PF: predicated region fallthrough
CT: control target
= control target key end

     0   :  { %6 = vsyncpa [#allocation3], 0  ;;  %s139_s0 = inlined_call_operand.hbm [shape: f32[1,128], index: 0, kind: input, shape index: {}]   ;;  %s140_s1 = inlined_call_operand.hbm [shape: f32[1,128], index: 1, kind: output, shape index: {}]  }
   0x1   :  { %7 = vsyncpa [#allocation4], 0  ;;  %s13_s8 = sshll.u32 %s139_s0, 4  ;;  %s118_s9 = smov [#allocation2]   ;;  %s14_s8 = int_to_ptr.hbm [resolvable:$true] %s13_s8 }
   0x2   :  { %s15_s10 = sshll.u32 %s118_s9, 4  ;;  %s16_s10 = int_to_ptr.vmem [resolvable:$true] %s15_s10 }
   0x3   :  { %18 = dma.hbm_to_vmem [thread:$0]  %s14_s8, 16, %s16_s10, [#allocation3]  }
   0x4   :  { %114 = dma.done.wait [#allocation3], 16  }
   0x5   :  { %115 = vsyncadd [#allocation3], 4294967280  ;;  %v65_v0 = vld [vmem:[#allocation2] ss:$0 sm:$0xff]  ;;  %s119_s11 = smov 126   ;;  %s120_s12 = smov 2   ;;  %v24_v1 = vlaneseq }
   0x6   :  { %30 = vrot.lane.b32.xlu0 %v65_v0, %s119_s11  ;;  %v23_v5 = vld [vmem:[#allocation2] sm:$0x1]  ;;  %v121_v6 = vmov 0.25   ;;  %s122_s0 = smov [#allocation5]   ;;  %s50_s16 = sshll.u32 %s140_s1, 4  ;;  %s51_s16 = int_to_ptr.hbm [resolvable:$true] %s50_s16 }
   0x7   :  { %v25_v2 = vand.u32 127, %v24_v1  ;;  %s48_s13 = sshll.u32 %s122_s0, 4  ;;  %s49_s13 = int_to_ptr.vmem [resolvable:$true] %s48_s13 }
   0x9   :  { %v26_v3 = vand.u32 3, %v25_v2 }
   0xb   :  { %vm27_vm0 = vcmp.lt.s32.totalorder %v26_v3, 2 }
   0xc   :  { %v38_v7 = vsel %vm27_vm0, -0.25, %v121_v6 }
   0xe   :  { %33 = vrot.lane.b32.xlu0 %v65_v0, %s120_s12 }
  0x78   :  { %v31_v4 = vpop.permute.xlu0 %30 }
  0x79   :  { %v37_v8 = vsel %vm27_vm0, %v31_v4, %v23_v5 }
  0x7a   :  { %v40_v11 = vmul.f32 %v38_v7, %v37_v8 }
  0x80   :  { %v34_v9 = vpop.permute.xlu0 %33 }
  0x81   :  { %v36_v10 = vsel %vm27_vm0, %v23_v5, %v34_v9 }
  0x82   :  { %v39_v12 = vmul.f32 0.5, %v36_v10 }
  0x84   :  { %v41_v13 = vadd.f32 %v40_v11, %v39_v12 }
  0x86   :  { %42 = vst [vmem:[#allocation5] sm:$0x1] %v41_v13 }
  0x87   :  { %53 = dma.vmem_to_hbm [thread:$0]  %s49_s13, 16, %s51_s16, [#allocation4]  }
  0x88   :  { %116 = dma.done.wait [#allocation4], 16  }
  0x89   :  { %117 = vsyncadd [#allocation4], 4294967280 }
  0x8a   :  { %58 = vsyncpa [#allocation3], 1 }
  0x8b   :  { %59 = vsyncpa [#allocation4], 1 }

</bundles_post_ra>
